<compile_context>
chip_gen: v7x
topology: tpu7x:2x2x1
jax: 0.10.0
libtpu: 0.0.40
codegen_flags: <defaults>
</compile_context>

<pallas_src>
import functools

import jax
import jax.numpy as jnp
from jax.experimental import pallas as pl
from jax.experimental.pallas import tpu as pltpu


def _round_up(x, m):
    return ((x + m - 1) // m) * m


def _apply_act(h, act):
    if act == "relu":
        return jax.nn.relu(h)
    if act == "gelu":
        # tanh-approximate gelu (lowers cleanly on the EUP).
        return jax.nn.gelu(h, approximate=True)
    if act in ("linear", "none", None):
        return h
    raise ValueError(f"unsupported hidden_act: {act}")


# ---------------------------------------------------------------------------
# Kernel 1: fused MLM prediction head
#   h_scratch = LayerNorm(act(x @ Wd + bd)) * gamma + beta   (once per M tile)
#   out[i, j] = h_scratch @ Wdec[:, j] + bdec[j]             (every V tile)
# ---------------------------------------------------------------------------
def _lm_head_kernel(x_ref, wd_ref, bd_ref, g_ref, b_ref, wdec_ref, bdec_ref,
                    o_ref, h_scratch, *, act: str, eps: float):
    @pl.when(pl.program_id(1) == 0)
    def _():
        h = jnp.dot(x_ref[...], wd_ref[...], preferred_element_type=jnp.float32)
        h = h + bd_ref[...].astype(jnp.float32)
        h = _apply_act(h, act)
        mean = jnp.mean(h, axis=-1, keepdims=True)
        var = jnp.mean(jnp.square(h - mean), axis=-1, keepdims=True)
        h = (h - mean) * jax.lax.rsqrt(var + eps)
        h = h * g_ref[...].astype(jnp.float32) + b_ref[...].astype(jnp.float32)
        h_scratch[...] = h

    y = jnp.dot(h_scratch[...].astype(wdec_ref.dtype), wdec_ref[...],
                preferred_element_type=jnp.float32)
    y = y + bdec_ref[...].astype(jnp.float32)
    o_ref[...] = y.astype(o_ref.dtype)


# ---------------------------------------------------------------------------
# Kernel 2: seq_relationship head (tiny: [B,H] @ [H,2] + [2])
# ---------------------------------------------------------------------------
def _seq_rel_kernel(p_ref, w_ref, b_ref, o_ref):
    y = jnp.dot(p_ref[...], w_ref[...], preferred_element_type=jnp.float32)
    o_ref[...] = (y + b_ref[...].astype(jnp.float32)).astype(o_ref.dtype)


def mobilebert_pretraining_heads(sequence_output, pooled_output, params, *,
                                 hidden_act="relu", layer_norm_eps=1e-12,
                                 tm_max=256, tn_max=512):
    """Pallas implementation of MobileBertPreTrainingHeads.forward.

    sequence_output: [B, S, H]
    pooled_output:   [B, H]
    params (PyTorch layout):
      dense_w [H,H], dense_b [H], ln_gamma [H], ln_beta [H],
      decoder_w [V,H], decoder_b [V], seqrel_w [2,H], seqrel_b [2]
    """
    B, S, H = sequence_output.shape
    V = params["decoder_w"].shape[0]
    M = B * S

    x = sequence_output.reshape(M, H)

    # --- M tiling: pipelined grid axis, multiple of 8 sublanes ---------------
    tm = min(tm_max, _round_up(M, 8))
    Mp = _round_up(M, tm)
    if Mp != M:
        x = jnp.pad(x, ((0, Mp - M), (0, 0)))

    # --- V tiling: lane-dense output (multiple of 128) -----------------------
    Vp = _round_up(V, 128)
    if Vp >= tn_max:
        tn = tn_max
        Vp = _round_up(V, tn)
    else:
        tn = Vp

    # Pre-transpose weights to [in, out] so the kernel does row-major matmuls.
    wd_t = params["dense_w"].T                      # [H, H]
    bd = params["dense_b"].reshape(1, H)
    gamma = params["ln_gamma"].reshape(1, H)
    beta = params["ln_beta"].reshape(1, H)
    wdec_t = params["decoder_w"].T                  # [H, V]
    bdec = params["decoder_b"].reshape(1, V)
    if Vp != V:
        wdec_t = jnp.pad(wdec_t, ((0, 0), (0, Vp - V)))
        bdec = jnp.pad(bdec, ((0, 0), (0, Vp - V)))

    grid = (Mp // tm, Vp // tn)
    kernel = functools.partial(_lm_head_kernel, act=hidden_act, eps=layer_norm_eps)

    scores = pl.pallas_call(
        kernel,
        out_shape=jax.ShapeDtypeStruct((Mp, Vp), sequence_output.dtype),
        grid_spec=pltpu.PrefetchScalarGridSpec(
            num_scalar_prefetch=0,
            grid=grid,
            in_specs=[
                pl.BlockSpec((tm, H), lambda i, j: (i, 0)),    # x tile
                pl.BlockSpec((H, H), lambda i, j: (0, 0)),     # dense W^T (resident)
                pl.BlockSpec((1, H), lambda i, j: (0, 0)),     # dense bias
                pl.BlockSpec((1, H), lambda i, j: (0, 0)),     # LN gamma
                pl.BlockSpec((1, H), lambda i, j: (0, 0)),     # LN beta
                pl.BlockSpec((H, tn), lambda i, j: (0, j)),    # decoder W^T tile
                pl.BlockSpec((1, tn), lambda i, j: (0, j)),    # decoder bias tile
            ],
            out_specs=pl.BlockSpec((tm, tn), lambda i, j: (i, j)),
            scratch_shapes=[pltpu.VMEM((tm, H), jnp.float32)],
        ),
        compiler_params=pltpu.CompilerParams(
            # M rows independent -> parallel (2 TCs on v7x); V carries the
            # h_scratch dependency within an M tile -> arbitrary.
            dimension_semantics=("parallel", "arbitrary")),
    )(x, wd_t, bd, gamma, beta, wdec_t, bdec)

    prediction_scores = scores[:M, :V].reshape(B, S, V)

    # --- NSP head: negligible size, single grid step, full-array blocks ------
    # TODO(synk): for throughput this 2-wide output could be padded to 128 lanes,
    # but it is ~B*2 elements and irrelevant to wall time.
    wsr_t = params["seqrel_w"].T                    # [H, 2]
    bsr = params["seqrel_b"].reshape(1, 2)
    seq_relationship_score = pl.pallas_call(
        _seq_rel_kernel,
        out_shape=jax.ShapeDtypeStruct((B, 2), pooled_output.dtype),
        grid_spec=pltpu.PrefetchScalarGridSpec(
            num_scalar_prefetch=0,
            grid=(1,),
            in_specs=[
                pl.BlockSpec((B, H), lambda i: (0, 0)),
                pl.BlockSpec((H, 2), lambda i: (0, 0)),
                pl.BlockSpec((1, 2), lambda i: (0, 0)),
            ],
            out_specs=pl.BlockSpec((B, 2), lambda i: (0, 0)),
        ),
        compiler_params=pltpu.CompilerParams(
            dimension_semantics=("arbitrary",)),
    )(pooled_output, wsr_t, bsr)

    return prediction_scores, seq_relationship_score


# ---------------------------------------------------------------------------
# Pure-JAX reference
# ---------------------------------------------------------------------------
def _reference(sequence_output, pooled_output, params, hidden_act="relu",
               eps=1e-12):
    h = jnp.einsum("bsh,hk->bsk", sequence_output, params["dense_w"].T)
    h = h + params["dense_b"]
    h = _apply_act(h, hidden_act)
    mean = jnp.mean(h, axis=-1, keepdims=True)
    var = jnp.mean(jnp.square(h - mean), axis=-1, keepdims=True)
    h = (h - mean) / jnp.sqrt(var + eps)
    h = h * params["ln_gamma"] + params["ln_beta"]
    scores = jnp.einsum("bsh,hv->bsv", h, params["decoder_w"].T) + params["decoder_b"]
    seq_rel = pooled_output @ params["seqrel_w"].T + params["seqrel_b"]
    return scores, seq_rel


if __name__ == "__main__":
    # Small MobileBERT-style config: hidden=32, vocab=512, batch=2, seq=8.
    B, S = 2, 8
    H = 32
    V = 512
    hidden_act = "relu"        # MobileBERT default
    eps = 1e-12

    key = jax.random.PRNGKey(0)
    ks = jax.random.split(key, 10)
    sequence_output = jax.random.normal(ks[0], (B, S, H), jnp.float32)
    pooled_output = jax.random.normal(ks[1], (B, H), jnp.float32)

    params = {
        "dense_w":   jax.random.normal(ks[2], (H, H), jnp.float32) / jnp.sqrt(H),
        "dense_b":   0.02 * jax.random.normal(ks[3], (H,), jnp.float32),
        "ln_gamma":  1.0 + 0.1 * jax.random.normal(ks[4], (H,), jnp.float32),
        "ln_beta":   0.1 * jax.random.normal(ks[5], (H,), jnp.float32),
        "decoder_w": jax.random.normal(ks[6], (V, H), jnp.float32) / jnp.sqrt(H),
        "decoder_b": 0.02 * jax.random.normal(ks[7], (V,), jnp.float32),
        "seqrel_w":  jax.random.normal(ks[8], (2, H), jnp.float32) / jnp.sqrt(H),
        "seqrel_b":  0.02 * jax.random.normal(ks[9], (2,), jnp.float32),
    }

    scores, seq_rel = mobilebert_pretraining_heads(
        sequence_output, pooled_output, params,
        hidden_act=hidden_act, layer_norm_eps=eps)
    scores = jax.block_until_ready(scores)
    seq_rel = jax.block_until_ready(seq_rel)

    ref_scores, ref_seq_rel = _reference(
        sequence_output, pooled_output, params, hidden_act, eps)

    assert scores.shape == (B, S, V)
    assert seq_rel.shape == (B, 2)
    assert jnp.allclose(scores, ref_scores, atol=1e-4, rtol=1e-4), \
        "prediction_scores mismatch vs reference"
    assert jnp.allclose(seq_rel, ref_seq_rel, atol=1e-5, rtol=1e-5), \
        "seq_relationship_score mismatch vs reference"

    print("KERNEL_OK")
</pallas_src>

<mosaic_0001>
module attributes {stable_mosaic.version = 11 : i64} {
  func.func @_lm_head_kernel(%arg0: i32, %arg1: i32, %arg2: memref<16x32xf32, #tpu.memory_space<vmem>>, %arg3: memref<32x32xf32, #tpu.memory_space<vmem>>, %arg4: memref<1x32xf32, #tpu.memory_space<vmem>>, %arg5: memref<1x32xf32, #tpu.memory_space<vmem>>, %arg6: memref<1x32xf32, #tpu.memory_space<vmem>>, %arg7: memref<32x512xf32, #tpu.memory_space<vmem>>, %arg8: memref<1x512xf32, #tpu.memory_space<vmem>>, %arg9: memref<16x512xf32, #tpu.memory_space<vmem>>, %arg10: memref<16x32xf32, #tpu.memory_space<vmem>>) attributes {dimension_semantics = [#tpu.dimension_semantics<parallel>, #tpu.dimension_semantics<arbitrary>], iteration_bounds = array<i64: 1, 1>, scalar_prefetch = 0 : i64, scratch_operands = 1 : i64, tpu.core_type = #tpu.core_type<tc>, window_params = [{transform_indices = @transform_0, window_bounds = array<i64: 16, 32>}, {pipeline_mode = #tpu.pipeline_mode<synchronous>, transform_indices = @transform_1, window_bounds = array<i64: 32, 32>}, {pipeline_mode = #tpu.pipeline_mode<synchronous>, transform_indices = @transform_2, window_bounds = array<i64: 1, 32>}, {pipeline_mode = #tpu.pipeline_mode<synchronous>, transform_indices = @transform_3, window_bounds = array<i64: 1, 32>}, {pipeline_mode = #tpu.pipeline_mode<synchronous>, transform_indices = @transform_4, window_bounds = array<i64: 1, 32>}, {transform_indices = @transform_5, window_bounds = array<i64: 32, 512>}, {transform_indices = @transform_6, window_bounds = array<i64: 1, 512>}, {transform_indices = @transform_7, window_bounds = array<i64: 16, 512>}]} {
    %c0_i32 = arith.constant 0 : i32
    %0 = arith.cmpi eq, %arg1, %c0_i32 : i32
    %1 = arith.extui %0 : i1 to i32
    %c0_i32_0 = arith.constant 0 : i32
    %2 = arith.cmpi ne, %1, %c0_i32_0 : i32
    scf.if %2 {
      %c0_8 = arith.constant 0 : index
      %c0_9 = arith.constant 0 : index
      %10 = vector.load %arg2[%c0_8, %c0_9] : memref<16x32xf32, #tpu.memory_space<vmem>>, vector<16x32xf32>
      %c0_10 = arith.constant 0 : index
      %c0_11 = arith.constant 0 : index
      %11 = vector.load %arg3[%c0_10, %c0_11] : memref<32x32xf32, #tpu.memory_space<vmem>>, vector<32x32xf32>
      %cst_12 = arith.constant dense<0.000000e+00> : vector<16x32xf32>
      %12 = tpu.matmul %10, %11, %cst_12 {dimension_numbers = #tpu.dot_dimension_numbers<[1], [0], [0], [1], [0, 0, 1, 1], [], []>} : vector<16x32xf32>, vector<32x32xf32>, vector<16x32xf32> -> vector<16x32xf32>
      %c0_13 = arith.constant 0 : index
      %c0_14 = arith.constant 0 : index
      %13 = vector.load %arg4[%c0_13, %c0_14] : memref<1x32xf32, #tpu.memory_space<vmem>>, vector<1x32xf32>
      %14 = vector.broadcast %13 : vector<1x32xf32> to vector<16x32xf32>
      %15 = arith.addf %12, %14 : vector<16x32xf32>
      %cst_15 = arith.constant 0.000000e+00 : f32
      %16 = vector.broadcast %cst_15 : f32 to vector<16x32xf32>
      %17 = arith.maximumf %15, %16 : vector<16x32xf32>
      %cst_16 = arith.constant dense<0.000000e+00> : vector<16xf32>
      %18 = vector.multi_reduction <add>, %17, %cst_16 [1] : vector<16x32xf32> to vector<16xf32>
      %19 = vector.shape_cast %18 : vector<16xf32> to vector<16x1xf32>
      %cst_17 = arith.constant 3.200000e+01 : f32
      %20 = vector.broadcast %cst_17 : f32 to vector<16x1xf32>
      %21 = arith.divf %19, %20 : vector<16x1xf32>
      %22 = vector.broadcast %21 : vector<16x1xf32> to vector<16x32xf32>
      %23 = arith.subf %17, %22 : vector<16x32xf32>
      %24 = arith.mulf %23, %23 : vector<16x32xf32>
      %cst_18 = arith.constant dense<0.000000e+00> : vector<16xf32>
      %25 = vector.multi_reduction <add>, %24, %cst_18 [1] : vector<16x32xf32> to vector<16xf32>
      %26 = vector.shape_cast %25 : vector<16xf32> to vector<16x1xf32>
      %cst_19 = arith.constant 3.200000e+01 : f32
      %27 = vector.broadcast %cst_19 : f32 to vector<16x1xf32>
      %28 = arith.divf %26, %27 : vector<16x1xf32>
      %29 = vector.broadcast %21 : vector<16x1xf32> to vector<16x32xf32>
      %30 = arith.subf %17, %29 : vector<16x32xf32>
      %cst_20 = arith.constant 9.99999996E-13 : f32
      %31 = vector.broadcast %cst_20 : f32 to vector<16x1xf32>
      %32 = arith.addf %28, %31 : vector<16x1xf32>
      %33 = math.rsqrt %32 : vector<16x1xf32>
      %34 = vector.broadcast %33 : vector<16x1xf32> to vector<16x32xf32>
      %35 = arith.mulf %30, %34 : vector<16x32xf32>
      %c0_21 = arith.constant 0 : index
      %c0_22 = arith.constant 0 : index
      %36 = vector.load %arg5[%c0_21, %c0_22] : memref<1x32xf32, #tpu.memory_space<vmem>>, vector<1x32xf32>
      %37 = vector.broadcast %36 : vector<1x32xf32> to vector<16x32xf32>
      %38 = arith.mulf %35, %37 : vector<16x32xf32>
      %c0_23 = arith.constant 0 : index
      %c0_24 = arith.constant 0 : index
      %39 = vector.load %arg6[%c0_23, %c0_24] : memref<1x32xf32, #tpu.memory_space<vmem>>, vector<1x32xf32>
      %40 = vector.broadcast %39 : vector<1x32xf32> to vector<16x32xf32>
      %41 = arith.addf %38, %40 : vector<16x32xf32>
      %c0_25 = arith.constant 0 : index
      %c0_26 = arith.constant 0 : index
      %42 = vector.load %arg10[%c0_25, %c0_26] : memref<16x32xf32, #tpu.memory_space<vmem>>, vector<16x32xf32>
      tpu.vector_store %arg10[%c0_25, %c0_26], %41 {strides = array<i32>} : memref<16x32xf32, #tpu.memory_space<vmem>>, vector<16x32xf32>,
    } else {
    }
    %c0 = arith.constant 0 : index
    %c0_1 = arith.constant 0 : index
    %3 = vector.load %arg10[%c0, %c0_1] : memref<16x32xf32, #tpu.memory_space<vmem>>, vector<16x32xf32>
    %c0_2 = arith.constant 0 : index
    %c0_3 = arith.constant 0 : index
    %4 = vector.load %arg7[%c0_2, %c0_3] : memref<32x512xf32, #tpu.memory_space<vmem>>, vector<32x512xf32>
    %cst = arith.constant dense<0.000000e+00> : vector<16x512xf32>
    %5 = tpu.matmul %3, %4, %cst {dimension_numbers = #tpu.dot_dimension_numbers<[1], [0], [0], [1], [0, 0, 1, 1], [], []>} : vector<16x32xf32>, vector<32x512xf32>, vector<16x512xf32> -> vector<16x512xf32>
    %c0_4 = arith.constant 0 : index
    %c0_5 = arith.constant 0 : index
    %6 = vector.load %arg8[%c0_4, %c0_5] : memref<1x512xf32, #tpu.memory_space<vmem>>, vector<1x512xf32>
    %7 = vector.broadcast %6 : vector<1x512xf32> to vector<16x512xf32>
    %8 = arith.addf %5, %7 : vector<16x512xf32>
    %c0_6 = arith.constant 0 : index
    %c0_7 = arith.constant 0 : index
    %9 = vector.load %arg9[%c0_6, %c0_7] : memref<16x512xf32, #tpu.memory_space<vmem>>, vector<16x512xf32>
    tpu.vector_store %arg9[%c0_6, %c0_7], %8 {strides = array<i32>} : memref<16x512xf32, #tpu.memory_space<vmem>>, vector<16x512xf32>,
    return
  }
  func.func @transform_0(%arg0: i32, %arg1: i32) -> (i32, i32) {
    %c0_i32 = arith.constant 0 : i32
    %c0_i32_0 = arith.constant 0 : i32
    return %arg0, %c0_i32 : i32, i32
  }
  func.func @transform_1(%arg0: i32, %arg1: i32) -> (i32, i32) {
    %c0_i32 = arith.constant 0 : i32
    %c0_i32_0 = arith.constant 0 : i32
    %c0_i32_1 = arith.constant 0 : i32
    return %c0_i32, %c0_i32_0 : i32, i32
  }
  func.func @transform_2(%arg0: i32, %arg1: i32) -> (i32, i32) {
    %c0_i32 = arith.constant 0 : i32
    %c0_i32_0 = arith.constant 0 : i32
    %c0_i32_1 = arith.constant 0 : i32
    return %c0_i32, %c0_i32_0 : i32, i32
  }
  func.func @transform_3(%arg0: i32, %arg1: i32) -> (i32, i32) {
    %c0_i32 = arith.constant 0 : i32
    %c0_i32_0 = arith.constant 0 : i32
    %c0_i32_1 = arith.constant 0 : i32
    return %c0_i32, %c0_i32_0 : i32, i32
  }
  func.func @transform_4(%arg0: i32, %arg1: i32) -> (i32, i32) {
    %c0_i32 = arith.constant 0 : i32
    %c0_i32_0 = arith.constant 0 : i32
    %c0_i32_1 = arith.constant 0 : i32
    return %c0_i32, %c0_i32_0 : i32, i32
  }
  func.func @transform_5(%arg0: i32, %arg1: i32) -> (i32, i32) {
    %c0_i32 = arith.constant 0 : i32
    %c0_i32_0 = arith.constant 0 : i32
    return %c0_i32, %arg1 : i32, i32
  }
  func.func @transform_6(%arg0: i32, %arg1: i32) -> (i32, i32) {
    %c0_i32 = arith.constant 0 : i32
    %c0_i32_0 = arith.constant 0 : i32
    return %c0_i32, %arg1 : i32, i32
  }
  func.func @transform_7(%arg0: i32, %arg1: i32) -> (i32, i32) {
    %c0_i32 = arith.constant 0 : i32
    return %arg0, %arg1 : i32, i32
  }
}

</mosaic_0001>

<bundles_post_ra>
// kernel: tpu_custom_call.1
= control target key start
LH: loop header
LB: loop body
LE: loop exit
PB: predicated region body
PF: predicated region fallthrough
CT: control target
= control target key end

     0   :  { %12 = vsyncpa [#allocation4], 0  ;;  %s738_s0 = inlined_call_operand.hbm [shape: f32[16,32], index: 0, kind: input, shape index: {}]   ;;  %s739_s1 = inlined_call_operand.hbm [shape: f32[32,32], index: 1, kind: input, shape index: {}]   ;;  %s740_s2 = inlined_call_operand.vmem [shape: f32[1,32], index: 2, kind: input, shape index: {}]   ;;  %s741_s3 = inlined_call_operand.vmem [shape: f32[1,32], index: 3, kind: input, shape index: {}]   ;;  %s742_s4 = inlined_call_operand.vmem [shape: f32[1,32], index: 4, kind: input, shape index: {}]   ;;  %s743_s5 = inlined_call_operand.hbm [shape: f32[32,512], index: 5, kind: input, shape index: {}]   ;;  %s744_s6 = inlined_call_operand.vmem [shape: f32[1,512], index: 6, kind: input, shape index: {}]   ;;  %s745_s7 = inlined_call_operand.hbm [shape: f32[16,512], index: 7, kind: output, shape index: {}]  }
   0x1   :  { %13 = vsyncpa [#allocation7], 0 }
   0x2   :  { %14 = vsyncpa [#allocation5], 0  ;;  %s604_s24 = smov [#allocation6]   ;;  %s605_s26 = smov [#allocation3]  }
   0x3   :  { %s32_s25 = sshll.u32 %s604_s24, 4  ;;  %s20_s27 = sshll.u32 %s605_s26, 4  ;;  %s33_s25 = int_to_ptr.vmem [resolvable:$true] %s32_s25  ;;  %s653_s27 = int_to_ptr.vmem [resolvable:$true] %s20_s27 }
   0x4   :  { %s510_s30 = scalar_lea.hbm %s739_s1, 512 }
   0x5   :  { %p511_p0 = scmp.ne.s32.totalorder %s739_s1, %s510_s30  ;;  %p514_p1 = scmp.lt.u32.totalorder %s510_s30, %s739_s1 }
   0x7   :  { %p516_p2 = pnand %p514_p1, %p511_p0 }
   0x9   :  { %519 = shalt.err (!%p516_p2)
}
   0xa   :  { %s520_s12 = scalar_lea.vmem %s33_s25, 512  ;;  %p525_p4 = scmp.lt.s32.totalorder %s33_s25, %s33_s25 }
   0xb   :  { %p521_p3 = scmp.ne.s32.totalorder %s33_s25, %s520_s12  ;;  %p526_p5 = scmp.lt.s32.totalorder %s520_s12, %s520_s12 }
   0xd   :  { %p527_p6 = por %p526_p5, %p525_p4 }
   0xf   :  { %p528_p7 = pnand %p527_p6, %p521_p3 }
  0x11   :  { %531 = shalt.err (!%p528_p7)
}
  0x12   :  { %s606_s13 = smov 128   ;;  %s607_s14 = smov 8  }
  0x13   :  { %38 = dma.hbm_to_vmem [thread:$0]  %s739_s1, 512, %s33_s25, [#allocation7], %s606_s13, %s606_s13, %s607_s14  }
  0x14   :  { %s532_s19 = scalar_lea.hbm %s738_s0, 256 }
  0x15   :  { %p533_p8 = scmp.ne.s32.totalorder %s738_s0, %s532_s19  ;;  %p536_p9 = scmp.lt.u32.totalorder %s532_s19, %s738_s0 }
  0x17   :  { %p538_p10 = pnand %p536_p9, %p533_p8 }
  0x19   :  { %541 = shalt.err (!%p538_p10)
}
  0x1a   :  { %s542_s24 = scalar_lea.vmem %s653_s27, 256  ;;  %p547_p12 = scmp.lt.s32.totalorder %s653_s27, %s653_s27 }
  0x1b   :  { %p543_p11 = scmp.ne.s32.totalorder %s653_s27, %s542_s24  ;;  %p548_p13 = scmp.lt.s32.totalorder %s542_s24, %s542_s24 }
  0x1d   :  { %p549_p0 = por %p548_p13, %p547_p12 }
  0x1f   :  { %p550_p1 = pnand %p549_p0, %p543_p11 }
  0x21   :  { %553 = shalt.err (!%p550_p1)
}
  0x22   :  { %26 = dma.hbm_to_vmem [thread:$0]  %s738_s0, 256, %s653_s27, [#allocation4], %s606_s13, %s606_s13, %s607_s14  }
  0x23   :  { %s608_s26 = smov [#allocation8]   ;;  %s554_s8 = scalar_lea.hbm %s743_s5, 2048 }
  0x24   :  { %s50_s28 = sshll.u32 %s608_s26, 4  ;;  %p555_p2 = scmp.ne.s32.totalorder %s743_s5, %s554_s8  ;;  %s51_s28 = int_to_ptr.vmem [resolvable:$true] %s50_s28 }
  0x25   :  { %p558_p3 = scmp.lt.u32.totalorder %s554_s8, %s743_s5 }
  0x27   :  { %p560_p4 = pnand %p558_p3, %p555_p2 }
  0x29   :  { %563 = shalt.err (!%p560_p4)
}
  0x2a   :  { %s564_s15 = scalar_lea.vmem %s51_s28, 2048  ;;  %p569_p6 = scmp.lt.s32.totalorder %s51_s28, %s51_s28 }
  0x2b   :  { %p565_p5 = scmp.ne.s32.totalorder %s51_s28, %s564_s15  ;;  %p570_p7 = scmp.lt.s32.totalorder %s564_s15, %s564_s15 }
  0x2d   :  { %p571_p8 = por %p570_p7, %p569_p6 }
  0x2f   :  { %p572_p9 = pnand %p571_p8, %p565_p5 }
  0x31   :  { %575 = shalt.err (!%p572_p9)
}
  0x32   :  { %s609_s0 = smov 512   ;;  %s610_s27 = smov 32  }
  0x33   :  { %56 = dma.hbm_to_vmem [thread:$0]  %s743_s5, 2048, %s51_s28, [#allocation7], %s609_s0, %s609_s0, %s610_s27  }
  0x34   :  { %598 = dma.done.wait [#allocation4], 256  }
  0x35   :  { %599 = vsyncadd [#allocation4], 4294967040 }
  0x36   :  { %600 = dma.done.wait [#allocation7], 2560  }
  0x37   :  { %601 = vsyncadd [#allocation7], 4294964736  ;;  %vm85_vm0 = vcmask 261120   ;;  %v74_v0 = vld [vmem:[#allocation6] sm:$0xff]  ;;  %v75_v1 = vld [vmem:[#allocation6 + $0x8] sm:$0xff]  ;;  %v611_v51 = vmov 0.0  }
  0x38   :  { %v76_v2 = vld [vmem:[#allocation6 + $0x10] sm:$0xff]  ;;  %v469_v3 = vpack.c.bf16 %v75_v1, %v74_v0  ;;  %v77_v4 = vld [vmem:[#allocation6 + $0x18] sm:$0xff]  ;;  %v443_v8 = vld [vmem:[%s740_s2] ss:$0 sm:$0xff]  ;;  %327 = vmatprep.mubr.f32.mxu1 %v611_v51 }
  0x39   :  { %v72_v5 = vld [vmem:[#allocation3] sm:$0xff]  ;;  %v473_v6 = vpack.c.bf16 %v77_v4, %v76_v2  ;;  %v73_v7 = vld [vmem:[#allocation3 + $0x8] sm:$0xff]  ;;  %v219_v27 = vld [vmem:[#allocation8 + $0x8] sm:$0xff] }
  0x3a   :  { %466 = vmatprep.mubr.msk.f32.mxu0 %vm85_vm0, %v72_v5  ;;  %470 = vmatprep.subr.bf16.mxu0 %v469_v3  ;;  %v223_v28 = vld [vmem:[#allocation8 + $0x28] sm:$0xff]  ;;  %v221_v29 = vld [vmem:[#allocation8 + $0x18] sm:$0xff]  ;;  %v218_v31 = vld [vmem:[#allocation8] sm:$0xff] }
  0x3b   :  { %472 = vmatpush3.bf16.msra.mxu0 %v469_v3  ;;  %v477_v30 = vpack.c.bf16 %v223_v28, %v219_v27  ;;  %v222_v32 = vld [vmem:[#allocation8 + $0x20] sm:$0xff]  ;;  %v225_v33 = vld [vmem:[#allocation8 + $0x38] sm:$0xff]  ;;  %v220_v36 = vld [vmem:[#allocation8 + $0x10] sm:$0xff] }
  0x3c   :  { %474 = vmatprep.subr.bf16.mxu0 %v473_v6  ;;  %v479_v34 = vpack.c.bf16 %v222_v32, %v218_v31  ;;  %v485_v35 = vpack.c.bf16 %v225_v33, %v221_v29  ;;  %v224_v37 = vld [vmem:[#allocation8 + $0x30] sm:$0xff]  ;;  %v227_v39 = vld [vmem:[#allocation8 + $0x48] sm:$0xff]  ;;  %v229_v41 = vld [vmem:[#allocation8 + $0x58] sm:$0xff] }
  0x3d   :  { %478 = vmatprep.subr.bf16.mxu1 %v477_v30  ;;  %v487_v38 = vpack.c.bf16 %v224_v37, %v220_v36  ;;  %v231_v40 = vld [vmem:[#allocation8 + $0x68] sm:$0xff]  ;;  %v226_v43 = vld [vmem:[#allocation8 + $0x40] sm:$0xff]  ;;  %v233_v45 = vld [vmem:[#allocation8 + $0x78] sm:$0xff] }
  0x3e   :  { %480 = vmatpush1.bf16.msra.mxu1 %v479_v34  ;;  %v481_v42 = vpack.c.bf16 %v231_v40, %v227_v39  ;;  %v230_v44 = vld [vmem:[#allocation8 + $0x60] sm:$0xff]  ;;  %v489_v47 = vpack.c.bf16 %v233_v45, %v229_v41  ;;  %v228_v48 = vld [vmem:[#allocation8 + $0x50] sm:$0xff] }
  0x3f   :  { %476 = vmatpush3.bf16.msra.mxu0 %v473_v6  ;;  %v483_v46 = vpack.c.bf16 %v230_v44, %v226_v43  ;;  %v232_v49 = vld [vmem:[#allocation8 + $0x70] sm:$0xff]  ;;  %v446_v59 = vld [vmem:[%s741_s3] ss:$0 sm:$0xff]  ;;  %v236_v6 = vlaneseq }
  0x40   :  { %486 = vmatprep.subr.bf16.mxu0 %v485_v35  ;;  %482 = vmatprep.subr.bf16.mxu1 %v481_v42  ;;  %v491_v50 = vpack.c.bf16 %v232_v49, %v228_v48  ;;  %v447_v61 = vld [vmem:[%s742_s4] ss:$0 sm:$0xff] }
  0x42   :  { %467 = vmatmul.mubr.msk.f32.vlgmr.msra.gmra.mrb[0].mxu0 %vm85_vm0, %v73_v7  ;;  %484 = vmatpush1.bf16.msra.mxu1 %v483_v46  ;;  %v237_v7 = vshrl.u32 %v236_v6, 7 }
  0x43   :  { %488 = vmatpush1.bf16.msra.mxu0 %v487_v38  ;;  %493 = vmatprep.subr.bf16.mxu1 %v485_v35 }
  0x44   :  { %490 = vmatprep.subr.bf16.mxu0 %v489_v47  ;;  %404 = vmatprep.mubr.f32.mxu0 %v611_v51 }
  0x47   :  { %492 = vmatpush1.bf16.msra.mxu0 %v491_v50 }
 0x115   :  { %v468_v9 = vpop.f32.mrb[0].mxu0 }
 0x116   :  { %v158_v10 = vpop.f32.mrb[1].mxu0  ;;  %v164_v11 = vadd.f32 %v468_v9, %v443_v8  ;;  %v246_v9 = vsub.s32 2, %v237_v7 }
 0x117   :  { %v159_v12 = vadd.f32 %v443_v8, %v158_v10  ;;  %v238_v8 = vsub.s32 0, %v237_v7  ;;  %v234_v10 = vld [vmem:[%s744_s6] sm:$0xf]  ;;  %s612_s6 = smov [#allocation9]  }
 0x118   :  { %v168_v14 = vmax.f32 %v164_v11, 0.0  ;;  %v242_v11 = vsub.s32 1, %v237_v7  ;;  %s430_s20 = sshll.u32 %s612_s6, 4  ;;  %s431_s20 = int_to_ptr.vmem [resolvable:$true] %s430_s20 }
 0x119   :  { %v167_v13 = vmax.f32 %v159_v12, 0.0  ;;  %v250_v12 = vsub.s32 3, %v237_v7  ;;  %s576_s21 = scalar_lea.vmem %s431_s20, 1024  ;;  %p581_p11 = scmp.lt.s32.totalorder %s431_s20, %s431_s20 }
 0x11a   :  { %v172_v16 = vsel %vm85_vm0, %v168_v14, 0.0  ;;  %p577_p10 = scmp.ne.s32.totalorder %s431_s20, %s576_s21  ;;  %p582_p12 = scmp.lt.s32.totalorder %s576_s21, %s576_s21 }
 0x11b   :  { %v169_v15 = vsel %vm85_vm0, %v167_v13, 0.0 }
 0x11c   :  { %170 = vadd.xlane.f32.xlu0 %v169_v15  ;;  %v243_v15 = vrot.slane %v234_v10, %v242_v11  ;;  %p583_p13 = por %p582_p12, %p581_p11 }
 0x11e   :  { %p584_p0 = pnand %p583_p13, %p577_p10 }
 0x120   :  { %173 = vadd.xlane.f32.xlu0 %v172_v16  ;;  %v251_v16 = vrot.slane %v234_v10, %v250_v12 }
 0x1a9   :  { %v171_v17 = vpop.xlane.xlu0 %170 }
 0x1aa   :  { %v176_v18 = vmul.f32 0.03125, %v171_v17 }
 0x1ac   :  { %v178_v19 = vsub.f32 %v167_v13, %v176_v18  ;;  %v239_v13 = vrot.slane %v234_v10, %v238_v8 }
 0x1ad   :  { %v174_v20 = vpop.xlane.xlu0 %173 }
 0x1ae   :  { %v177_v21 = vmul.f32 0.03125, %v174_v20  ;;  %v180_v22 = vmul.f32 %v178_v19, %v178_v19 }
 0x1b0   :  { %v179_v23 = vsub.f32 %v168_v14, %v177_v21  ;;  %v182_v24 = vsel %vm85_vm0, %v180_v22, 0.0  ;;  %v247_v14 = vrot.slane %v234_v10, %v246_v9 }
 0x1b1   :  { %183 = vadd.xlane.f32.xlu1 %v182_v24 }
 0x1b2   :  { %v181_v25 = vmul.f32 %v179_v23, %v179_v23 }
 0x1b4   :  { %v185_v26 = vsel %vm85_vm0, %v181_v25, 0.0 }
 0x1b5   :  { %186 = vadd.xlane.f32.xlu1 %v185_v26 }
 0x23e   :  { %v184_v52 = vpop.xlane.xlu1 %183 }
 0x23f   :  { %v188_v53 = vmul.f32 0.03125, %v184_v52 }
 0x241   :  { %v190_v54 = vadd.f32 1e-12, %v188_v53 }
 0x242   :  { %v187_v55 = vpop.xlane.xlu1 %186 }
 0x243   :  { %506 = vrsqrt.f32 %v190_v54  ;;  %v189_v56 = vmul.f32 0.03125, %v187_v55 }
 0x245   :  { %v191_v57 = vadd.f32 1e-12, %v189_v56 }
 0x247   :  { %508 = vrsqrt.f32 %v191_v57 }
 0x24d   :  { %v507_v58 = vpop.eup %506 }
 0x24e   :  { %v194_v60 = vmul.f32 %v507_v58, %v178_v19 }
 0x250   :  { %v203_v62 = vmul.f32 %v446_v59, %v194_v60 }
 0x251   :  { %v509_v63 = vpop.eup %508 }
 0x252   :  { %v212_v0 = vadd.f32 %v447_v61, %v203_v62  ;;  %v195_v1 = vmul.f32 %v509_v63, %v179_v23 }
 0x254   :  { %214 = vst.msk [vmem:[#allocation2] sm:$0xff] %vm85_vm0, %v212_v0  ;;  %v204_v2 = vmul.f32 %v446_v59, %v195_v1 }
 0x256   :  { %v213_v3 = vadd.f32 %v447_v61, %v204_v2 }
 0x258   :  { %215 = vst.msk [vmem:[#allocation2 + $0x8] sm:$0xff] %vm85_vm0, %v213_v3 }
 0x25b   :  { %v216_v4 = vld [vmem:[#allocation2] sm:$0xff] }
 0x25c   :  { %448 = vmatmul.mubr.msk.f32.vlgmr.msra.gmra.mrb[0].mxu1 %vm85_vm0, %v216_v4  ;;  %450 = vmatmul.mubr.msk.f32.vlgmr.msra.gmra.mrb[2].mxu0 %vm85_vm0, %v216_v4 }
 0x25d   :  { %495 = vmatpush1.bf16.msra.mxu1 %v487_v38  ;;  %333 = vmatprep.mubr.f32.mxu1 %v611_v51 }
 0x25e   :  { %494 = vmatprep.subr.bf16.mxu1 %v489_v47 }
 0x25f   :  { %v217_v5 = vld [vmem:[#allocation2 + $0x8] sm:$0xff] }
 0x260   :  { %449 = vmatmul.mubr.msk.f32.gmra.mrb[2].mxu1 %vm85_vm0, %v217_v5 }
 0x261   :  { %496 = vmatpush1.bf16.msra.mxu1 %v491_v50  ;;  %410 = vmatprep.mubr.f32.mxu1 %v611_v51 }
 0x264   :  { %451 = vmatmul.mubr.msk.f32.vlgmr.msra.gmra.mrb[4].mxu1 %vm85_vm0, %v217_v5 }
 0x32f   :  { %v329_v17 = vpop.f32.mrb[0].mxu1  ;;  %v406_v18 = vpop.f32.mrb[2].mxu0 }
 0x330   :  { %v330_v19 = vadd.f32 %v329_v17, %v239_v13  ;;  %v407_v20 = vadd.f32 %v406_v18, %v247_v14  ;;  %v331_v21 = vpop.f32.mrb[1].mxu1  ;;  %v408_v22 = vpop.f32.mrb[3].mxu0 }
 0x331   :  { %v332_v23 = vadd.f32 %v331_v21, %v243_v15  ;;  %v409_v24 = vadd.f32 %v408_v22, %v251_v16 }
 0x332   :  { %417 = vst [vmem:[#allocation9] sm:$0xff] %v330_v19  ;;  %419 = vst [vmem:[#allocation9 + $0x10] sm:$0xff] %v407_v20 }
 0x333   :  { %418 = vst [vmem:[#allocation9 + $0x8] sm:$0xff] %v332_v23  ;;  %420 = vst [vmem:[#allocation9 + $0x18] sm:$0xff] %v409_v24  ;;  %v335_v25 = vpop.f32.mrb[2].mxu1 }
 0x334   :  { %v336_v26 = vadd.f32 %v335_v25, %v239_v13  ;;  %v337_v27 = vpop.f32.mrb[3].mxu1 }
 0x335   :  { %v338_v28 = vadd.f32 %v337_v27, %v243_v15 }
 0x336   :  { %421 = vst [vmem:[#allocation9 + $0x20] sm:$0xff] %v336_v26 }
 0x337   :  { %422 = vst [vmem:[#allocation9 + $0x28] sm:$0xff] %v338_v28  ;;  %v412_v29 = vpop.f32.mrb[4].mxu1 }
 0x338   :  { %v413_v30 = vadd.f32 %v412_v29, %v247_v14  ;;  %v414_v31 = vpop.f32.mrb[5].mxu1 }
 0x339   :  { %v415_v32 = vadd.f32 %v414_v31, %v251_v16 }
 0x33a   :  { %423 = vst [vmem:[#allocation9 + $0x30] sm:$0xff] %v413_v30 }
 0x33b   :  { %424 = vst [vmem:[#allocation9 + $0x38] sm:$0xff] %v415_v32 }
 0x33c   :  { %587 = shalt.err (!%p584_p0)
}
 0x33d   :  { %s588_s24 = scalar_lea.hbm %s745_s7, 1024 }
 0x33e   :  { %p589_p1 = scmp.ne.s32.totalorder %s745_s7, %s588_s24  ;;  %p592_p2 = scmp.lt.u32.totalorder %s588_s24, %s745_s7 }
 0x340   :  { %p594_p3 = pnand %p592_p2, %p589_p1 }
 0x342   :  { %597 = shalt.err (!%p594_p3)
}
 0x343   :  { %436 = dma.vmem_to_hbm [thread:$0]  %s431_s20, 1024, %s745_s7, [#allocation5], %s609_s0, %s609_s0, %s610_s27  }
 0x344   :  { %602 = dma.done.wait [#allocation5], 1024  }
 0x345   :  { %603 = vsyncadd [#allocation5], 4294966272 }
 0x346   :  { %440 = vsyncpa [#allocation4], 1 }
 0x347   :  { %441 = vsyncpa [#allocation7], 1 }
 0x348   :  { %442 = vsyncpa [#allocation5], 1 }

</bundles_post_ra>
